<compile_context>
chip_gen: v6e
topology: v6e:2x2x1
jax: 0.10.0
libtpu: 0.0.40
codegen_flags: <defaults>
</compile_context>

<pallas_src>
import jax
import jax.numpy as jnp
from jax import lax
from jax.experimental import pallas as pl
from jax.experimental.pallas import tpu as pltpu


def _round_up(x, m):
    return (x + m - 1) // m * m


# ---------------------------------------------------------------------------
# Pass 1: conv-as-matmul over im2col rows + per-channel sum / sum-of-squares.
# ---------------------------------------------------------------------------
def _conv_stats_kernel(cols_ref, w_ref, conv_ref, sum_ref, ssq_ref):
    # cols_ref: (TM, Kp)  row tile of the im2col matrix
    # w_ref:    (Kp, Cp)  full padded weight (constant index map -> resident)
    # conv_ref: (TM, Cp)  raw conv output tile (lane-dense)
    # sum_ref:  (1, Cp)   per-channel running sum        (grid-resident accumulator)
    # ssq_ref:  (1, Cp)   per-channel running sum-of-sq  (grid-resident accumulator)
    acc = jnp.dot(cols_ref[...], w_ref[...], preferred_element_type=jnp.float32)
    conv_ref[...] = acc

    @pl.when(pl.program_id(0) == 0)
    def _():
        sum_ref[...] = jnp.zeros_like(sum_ref)
        ssq_ref[...] = jnp.zeros_like(ssq_ref)

    sum_ref[...] += jnp.sum(acc, axis=0, keepdims=True)
    ssq_ref[...] += jnp.sum(acc * acc, axis=0, keepdims=True)


# ---------------------------------------------------------------------------
# Pass 2: fused BN affine (y = conv * scale + shift) + ReLU, pure streaming.
# ---------------------------------------------------------------------------
def _bn_relu_kernel(conv_ref, scale_ref, shift_ref, o_ref):
    y = conv_ref[...] * scale_ref[...] + shift_ref[...]
    o_ref[...] = jnp.maximum(y, 0.0).astype(o_ref.dtype)


def cbr_forward(x_nchw, weight_oihw, bias, gamma, beta, *,
                stride=1, padding=2, eps=1e-5, tm=256):
    """NCHW in / NCHW out, matching the PyTorch CBR module's forward."""
    N, Cin, H, W = x_nchw.shape
    Cout, _, KH, KW = weight_oihw.shape
    Ho = (H + 2 * padding - KH) // stride + 1
    Wo = (W + 2 * padding - KW) // stride + 1

    M = N * Ho * Wo                      # number of output pixels (rows)
    K = KH * KW * Cin                    # contraction depth
    Kp = _round_up(K, 128)               # lane-align contraction dim
    Cp = _round_up(Cout, 128)            # lane-align output channels
    tm = max(8, _round_up(min(tm, _round_up(M, 8)), 8))
    Mp = _round_up(M, tm)                # row-padded so the grid divides evenly
    grid = (Mp // tm,)

    # ---- im2col in the wrapper (XLA) so the kernel sees a single big matmul.
    f32 = jnp.float32
    x_nhwc = jnp.transpose(x_nchw, (0, 2, 3, 1)).astype(f32)
    x_pad = jnp.pad(x_nhwc,
                    ((0, 0), (padding, padding), (padding, padding), (0, 0)))
    taps = []
    for kh in range(KH):
        for kw in range(KW):
            taps.append(x_pad[:, kh:kh + (Ho - 1) * stride + 1:stride,
                              kw:kw + (Wo - 1) * stride + 1:stride, :])
    cols = jnp.concatenate(taps, axis=-1).reshape(M, K)   # (M, KH*KW*Cin)
    cols = jnp.pad(cols, ((0, Mp - M), (0, Kp - K)))      # zero-pad rows & K

    # Weight laid out to match the (kh, kw, cin) ordering of `cols`, zero-padded
    # so both matmul dims are multiples of 128.
    w2d = jnp.transpose(weight_oihw, (2, 3, 1, 0)).reshape(K, Cout).astype(f32)
    w2d = jnp.pad(w2d, ((0, Kp - K), (0, Cp - Cout)))

    # ---- Pass 1: conv tiles + global per-channel sum / sum-of-squares.
    conv2d, sums, ssqs = pl.pallas_call(
        _conv_stats_kernel,
        grid=grid,
        in_specs=[
            pl.BlockSpec((tm, Kp), lambda i: (i, 0)),
            pl.BlockSpec((Kp, Cp), lambda i: (0, 0)),
        ],
        out_specs=[
            pl.BlockSpec((tm, Cp), lambda i: (i, 0)),
            pl.BlockSpec((1, Cp), lambda i: (0, 0)),
            pl.BlockSpec((1, Cp), lambda i: (0, 0)),
        ],
        out_shape=[
            jax.ShapeDtypeStruct((Mp, Cp), f32),
            jax.ShapeDtypeStruct((1, Cp), f32),
            jax.ShapeDtypeStruct((1, Cp), f32),
        ],
        compiler_params=pltpu.CompilerParams(
            dimension_semantics=("arbitrary",),   # grid carries the BN accumulators
            vmem_limit_bytes=32 * 1024 * 1024),
    )(cols, w2d)

    # ---- BN statistics over the true M rows (padded rows contribute exact zeros),
    #      fused into a single per-channel scale/shift for the streaming pass.
    count = jnp.float32(M)
    mean = sums / count                                    # (1, Cp)
    var = jnp.maximum(ssqs / count - mean * mean, 0.0)     # biased (train-mode) var
    gamma_p = jnp.pad(gamma.astype(f32), (0, Cp - Cout)).reshape(1, Cp)
    beta_p = jnp.pad(beta.astype(f32), (0, Cp - Cout)).reshape(1, Cp)
    scale = gamma_p * lax.rsqrt(var + eps)
    shift = beta_p - scale * mean
    # Conv bias intentionally not applied: it is exactly cancelled by the BN mean
    # subtraction and does not affect the variance (train-mode semantics).
    del bias
    # TODO(synk): BatchNorm running_mean/running_var buffer updates are not computed
    # (forward activation only).

    # ---- Pass 2: normalize + ReLU (lane-dense loads/stores, fully parallel).
    out2d = pl.pallas_call(
        _bn_relu_kernel,
        grid=grid,
        in_specs=[
            pl.BlockSpec((tm, Cp), lambda i: (i, 0)),
            pl.BlockSpec((1, Cp), lambda i: (0, 0)),
            pl.BlockSpec((1, Cp), lambda i: (0, 0)),
        ],
        out_specs=pl.BlockSpec((tm, Cp), lambda i: (i, 0)),
        out_shape=jax.ShapeDtypeStruct((Mp, Cp), x_nchw.dtype),
        compiler_params=pltpu.CompilerParams(
            dimension_semantics=("parallel",),
            vmem_limit_bytes=32 * 1024 * 1024),
    )(conv2d, scale, shift)

    out = out2d[:M, :Cout].reshape(N, Ho, Wo, Cout)
    return jnp.transpose(out, (0, 3, 1, 2))


def _reference(x_nchw, weight, bias, gamma, beta, *, stride, padding, eps):
    y = lax.conv_general_dilated(
        x_nchw, weight, window_strides=(stride, stride),
        padding=[(padding, padding), (padding, padding)],
        dimension_numbers=("NCHW", "OIHW", "NCHW"))
    y = y + bias[None, :, None, None]
    mean = y.mean(axis=(0, 2, 3), keepdims=True)
    var = ((y - mean) ** 2).mean(axis=(0, 2, 3), keepdims=True)
    y = gamma[None, :, None, None] * (y - mean) / jnp.sqrt(var + eps) \
        + beta[None, :, None, None]
    return jnp.maximum(y, 0.0)


if __name__ == "__main__":
    key = jax.random.PRNGKey(0)
    k_x, k_w, k_b = jax.random.split(key, 3)

    N, Cin, H, W = 2, 4, 16, 16
    Cout, KH, KW = 8, 5, 5
    stride, padding, eps = 1, 2, 1e-5

    x = jax.random.normal(k_x, (N, Cin, H, W), dtype=jnp.float32)
    weight = 0.1 * jax.random.normal(k_w, (Cout, Cin, KH, KW), dtype=jnp.float32)
    bias = 0.01 * jax.random.normal(k_b, (Cout,), dtype=jnp.float32)
    gamma = 1.0 + 0.1 * jnp.arange(Cout, dtype=jnp.float32)
    beta = 0.05 * jnp.arange(Cout, dtype=jnp.float32)

    out = cbr_forward(x, weight, bias, gamma, beta,
                      stride=stride, padding=padding, eps=eps)
    out = jax.block_until_ready(out)

    ref = _reference(x, weight, bias, gamma, beta,
                     stride=stride, padding=padding, eps=eps)
    assert out.shape == (N, Cout, H, W)
    assert jnp.allclose(out, ref, rtol=1e-4, atol=1e-4), \
        float(jnp.max(jnp.abs(out - ref)))

    print("KERNEL_OK")
</pallas_src>

<mosaic_0001>
module attributes {stable_mosaic.version = 11 : i64} {
  func.func @_conv_stats_kernel(%arg0: i32, %arg1: memref<256x128xf32, #tpu.memory_space<vmem>>, %arg2: memref<128x128xf32, #tpu.memory_space<vmem>>, %arg3: memref<256x128xf32, #tpu.memory_space<vmem>>, %arg4: memref<1x128xf32, #tpu.memory_space<vmem>>, %arg5: memref<1x128xf32, #tpu.memory_space<vmem>>) attributes {dimension_semantics = [#tpu.dimension_semantics<arbitrary>], iteration_bounds = array<i64: 2>, scalar_prefetch = 0 : i64, scratch_operands = 0 : i64, tpu.core_type = #tpu.core_type<tc>, window_params = [{transform_indices = @transform_0, window_bounds = array<i64: 256, 128>}, {pipeline_mode = #tpu.pipeline_mode<synchronous>, transform_indices = @transform_1, window_bounds = array<i64: 128, 128>}, {transform_indices = @transform_2, window_bounds = array<i64: 256, 128>}, {pipeline_mode = #tpu.pipeline_mode<synchronous>, transform_indices = @transform_3, window_bounds = array<i64: 1, 128>}, {pipeline_mode = #tpu.pipeline_mode<synchronous>, transform_indices = @transform_4, window_bounds = array<i64: 1, 128>}]} {
    %c0 = arith.constant 0 : index
    %c0_0 = arith.constant 0 : index
    %0 = vector.load %arg1[%c0, %c0_0] : memref<256x128xf32, #tpu.memory_space<vmem>>, vector<256x128xf32>
    %c0_1 = arith.constant 0 : index
    %c0_2 = arith.constant 0 : index
    %1 = vector.load %arg2[%c0_1, %c0_2] : memref<128x128xf32, #tpu.memory_space<vmem>>, vector<128x128xf32>
    %cst = arith.constant dense<0.000000e+00> : vector<256x128xf32>
    %2 = tpu.matmul %0, %1, %cst {dimension_numbers = #tpu.dot_dimension_numbers<[1], [0], [0], [1], [0, 0, 1, 1], [], []>} : vector<256x128xf32>, vector<128x128xf32>, vector<256x128xf32> -> vector<256x128xf32>
    %c0_3 = arith.constant 0 : index
    %c0_4 = arith.constant 0 : index
    %3 = vector.load %arg3[%c0_3, %c0_4] : memref<256x128xf32, #tpu.memory_space<vmem>>, vector<256x128xf32>
    tpu.vector_store %arg3[%c0_3, %c0_4], %2 {strides = array<i32>} : memref<256x128xf32, #tpu.memory_space<vmem>>, vector<256x128xf32>,
    %c0_i32 = arith.constant 0 : i32
    %4 = arith.cmpi eq, %arg0, %c0_i32 : i32
    %5 = arith.extui %4 : i1 to i32
    %c0_i32_5 = arith.constant 0 : i32
    %6 = arith.cmpi ne, %5, %c0_i32_5 : i32
    scf.if %6 {
      %cst_16 = arith.constant 0.000000e+00 : f32
      %18 = vector.broadcast %cst_16 : f32 to vector<1x128xf32>
      %c0_17 = arith.constant 0 : index
      %c0_18 = arith.constant 0 : index
      %19 = vector.load %arg4[%c0_17, %c0_18] : memref<1x128xf32, #tpu.memory_space<vmem>>, vector<1x128xf32>
      tpu.vector_store %arg4[%c0_17, %c0_18], %18 {strides = array<i32>} : memref<1x128xf32, #tpu.memory_space<vmem>>, vector<1x128xf32>,
      %cst_19 = arith.constant 0.000000e+00 : f32
      %20 = vector.broadcast %cst_19 : f32 to vector<1x128xf32>
      %c0_20 = arith.constant 0 : index
      %c0_21 = arith.constant 0 : index
      %21 = vector.load %arg5[%c0_20, %c0_21] : memref<1x128xf32, #tpu.memory_space<vmem>>, vector<1x128xf32>
      tpu.vector_store %arg5[%c0_20, %c0_21], %20 {strides = array<i32>} : memref<1x128xf32, #tpu.memory_space<vmem>>, vector<1x128xf32>,
    } else {
    }
    %c0_6 = arith.constant 0 : index
    %c0_7 = arith.constant 0 : index
    %7 = vector.load %arg4[%c0_6, %c0_7] : memref<1x128xf32, #tpu.memory_space<vmem>>, vector<1x128xf32>
    %cst_8 = arith.constant dense<0.000000e+00> : vector<128xf32>
    %8 = vector.multi_reduction <add>, %2, %cst_8 [0] : vector<256x128xf32> to vector<128xf32>
    %9 = vector.shape_cast %8 : vector<128xf32> to vector<1x128xf32>
    %10 = arith.addf %7, %9 : vector<1x128xf32>
    %c0_9 = arith.constant 0 : index
    %c0_10 = arith.constant 0 : index
    %11 = vector.load %arg4[%c0_9, %c0_10] : memref<1x128xf32, #tpu.memory_space<vmem>>, vector<1x128xf32>
    tpu.vector_store %arg4[%c0_9, %c0_10], %10 {strides = array<i32>} : memref<1x128xf32, #tpu.memory_space<vmem>>, vector<1x128xf32>,
    %c0_11 = arith.constant 0 : index
    %c0_12 = arith.constant 0 : index
    %12 = vector.load %arg5[%c0_11, %c0_12] : memref<1x128xf32, #tpu.memory_space<vmem>>, vector<1x128xf32>
    %13 = arith.mulf %2, %2 : vector<256x128xf32>
    %cst_13 = arith.constant dense<0.000000e+00> : vector<128xf32>
    %14 = vector.multi_reduction <add>, %13, %cst_13 [0] : vector<256x128xf32> to vector<128xf32>
    %15 = vector.shape_cast %14 : vector<128xf32> to vector<1x128xf32>
    %16 = arith.addf %12, %15 : vector<1x128xf32>
    %c0_14 = arith.constant 0 : index
    %c0_15 = arith.constant 0 : index
    %17 = vector.load %arg5[%c0_14, %c0_15] : memref<1x128xf32, #tpu.memory_space<vmem>>, vector<1x128xf32>
    tpu.vector_store %arg5[%c0_14, %c0_15], %16 {strides = array<i32>} : memref<1x128xf32, #tpu.memory_space<vmem>>, vector<1x128xf32>,
    return
  }
  func.func @transform_0(%arg0: i32) -> (i32, i32) {
    %c0_i32 = arith.constant 0 : i32
    %c0_i32_0 = arith.constant 0 : i32
    return %arg0, %c0_i32 : i32, i32
  }
  func.func @transform_1(%arg0: i32) -> (i32, i32) {
    %c0_i32 = arith.constant 0 : i32
    %c0_i32_0 = arith.constant 0 : i32
    %c0_i32_1 = arith.constant 0 : i32
    return %c0_i32, %c0_i32_0 : i32, i32
  }
  func.func @transform_2(%arg0: i32) -> (i32, i32) {
    %c0_i32 = arith.constant 0 : i32
    %c0_i32_0 = arith.constant 0 : i32
    return %arg0, %c0_i32 : i32, i32
  }
  func.func @transform_3(%arg0: i32) -> (i32, i32) {
    %c0_i32 = arith.constant 0 : i32
    %c0_i32_0 = arith.constant 0 : i32
    %c0_i32_1 = arith.constant 0 : i32
    return %c0_i32, %c0_i32_0 : i32, i32
  }
  func.func @transform_4(%arg0: i32) -> (i32, i32) {
    %c0_i32 = arith.constant 0 : i32
    %c0_i32_0 = arith.constant 0 : i32
    %c0_i32_1 = arith.constant 0 : i32
    return %c0_i32, %c0_i32_0 : i32, i32
  }
}

</mosaic_0001>

<bundles_post_ra>
// kernel: tpu_custom_call.1
= control target key start
LH: loop header
LB: loop body
LE: loop exit
PB: predicated region body
PF: predicated region fallthrough
CT: control target
= control target key end

     0   :  { %10 = vsyncpa [#allocation3], 0  ;;  %s1731_s0 = inlined_call_operand.hbm [shape: f32[512,128], index: 0, kind: input, shape index: {}]   ;;  %s1732_s1 = inlined_call_operand.hbm [shape: f32[128,128], index: 1, kind: input, shape index: {}]   ;;  %s1733_s2 = inlined_call_operand.hbm [shape: f32[512,128], index: 2, kind: output, shape index: {0}]   ;;  %s1734_s3 = inlined_call_operand.hbm [shape: f32[1,128], index: 3, kind: output, shape index: {1}]   ;;  %s1735_s4 = inlined_call_operand.hbm [shape: f32[1,128], index: 4, kind: output, shape index: {2}]  }
   0x1   :  { %12 = vsyncpa [#allocation3 + $0x1], 0 }
   0x2   :  { %13 = vsyncpa [#allocation6], 0 }
   0x3   :  { %14 = vsyncpa [#allocation4], 0 }
   0x4   :  { %16 = vsyncpa [#allocation4 + $0x1], 0 }
   0x5   :  { %17 = vsyncpa [#allocation9], 0  ;;  %s1262_s15 = smov 0   ;;  %s1264_s16 = smov 0  }
   0x6   :  { %s1266_s17 = smov 0   ;;  %s1268_s18 = smov 0  }
   0x7 LB: > { %s1283_s19 = sadd.s32 4294967295, %s1225_s18   ;;  %s792_s20 = sadd.s32 4294967294, %s1225_s18   ;;  %s1225_s18 = sphi %s1268_s18, %s1764_s18   ;;  %s1221_s17 = sphi %s1266_s17, %s1763_s17   ;;  %s1217_s16 = sphi %s1264_s16, %s1762_s16   ;;  %s1213_s15 = sphi %s1262_s15, %s1761_s15  }
   0x8   : > { %p43_p0 = scmp.ne.s32.totalorder %s1217_s16, %s1213_s15  ;;  %p1736_p1 = scmp.eq.s32.totalorder %s1283_s19, 0 }
   0x9   : > { %p94_p3 = scmp.eq.s32.totalorder %s792_s20, 1  ;;  %p793_p5 = scmp.ge.s32.totalorder %s1225_s18, 1 }
   0xa   : > { %p1292_p4 = por %p1736_p1, %p43_p0  ;;  %p143_p7 = scmp.lt.s32.totalorder %s1225_s18, 3 }
   0xb   : > { %p1297_p6 = por %p94_p3, %p43_p0  ;;  %s1227_s24 = smov [#allocation5]  }
   0xc   : > { %s1740_s21 = scalar_select %p1292_p4, 1, 0 }
   0xd   : > { %s1741_s22 = scalar_select %p1297_p6, 1, 0 }
   0xe   : > { %p1303_p9 = pnand %p793_p5, %p143_p7  ;;  %s155_s25 = sshll.u32 %s1227_s24, 4  ;;  %s156_s25 = int_to_ptr.vmem [resolvable:$true] %s155_s25 }
   0xf   : > { %s1317_s27 = sadd.s32 1, %s1225_s18   ;;  %s30_s28 = sadd.s32 1, %s1221_s17 }
  0x10   : > { %s1742_s23 = scalar_select %p1303_p9, 1, 0 }
  0x11   : > { %p991_p10 = pneg %p1303_p9  ;;  %s27_s29 = ssub.s32 %s1225_s18, %s1317_s27 }
  0x12   : > { %s1062_s30 = scalar_lea.vmem %s156_s25, 2048  ;;  %p1070_p7 = scmp.lt.s32.totalorder %s156_s25, %s156_s25 }
  0x13   : > { %p1312_p12 = pnand %p991_p10, %p1736_p1  ;;  %p1063_p0 = scmp.ne.s32.totalorder %s156_s25, %s1062_s30 }
  0x14   : > { %p1071_p8 = scmp.lt.s32.totalorder %s1062_s30, %s1062_s30 }
  0x15   : > { %p1053_p13 = pneg %p1312_p12 }
  0x16   : > { %p1072_p11 = por %p1071_p8, %p1070_p7 }
  0x17   : > { %p1065_p3 = pnand %p1063_p0, %p1053_p13 }
  0x19   : > { %p1066_p5 = pneg %p1065_p3 }
  0x1b   : > { %p1073_p2 = pnand %p1072_p11, %p1066_p5 }
  0x1d   : > { %1076 = shalt.err (!%p1073_p2)
}
  0x1e   : > { %s1228_s5 = smov 128   ;;  %s1229_s6 = smov 8  }
  0x1f   : > { %994 = dma.hbm_to_vmem [thread:$0]  (!%p1312_p12), %s1732_s1, 2048, %s156_s25, [#allocation6], %s1228_s5, %s1228_s5, %s1229_s6  }
  0x20   : > { %p28_p2 = scmp.eq.s32.totalorder %s27_s29, 0  ;;  %p37_p8 = scmp.ne.s32.totalorder %s1221_s17, %s1217_s16 }
  0x21   : > { %p38_p10 = scmp.eq.s32.totalorder %s1225_s18, 0  ;;  %p1004_p11 = scmp.lt.s32.totalorder %s1225_s18, 2 }
  0x22   : > { %s1337_s9 = scalar_select %p28_p2, %s1221_s17, %s30_s28  }
  0x23   : > { %p39_p13 = por %p38_p10, %p37_p8  ;;  %p1744_p0 = scmp.eq.s32.totalorder %s1283_s19, 1 }
  0x24   : > { %s169_s11 = sand.u32 1, %s1221_s17   ;;  %s813_s12 = sshll.u32 %s1225_s18, 12 }
  0x25   : > { %p1341_p3 = por %p1744_p0, %p37_p8  ;;  %s796_s13 = sshll.u32 %s169_s11, 8 }
  0x26   : > { %s1350_s24 = scalar_lea.hbm %s1731_s0, %s813_s12  ;;  %s173_s25 = scalar_lea.vmem [#allocation2], %s796_s13 }
  0x27   : > { %s1745_s10 = scalar_select %p1341_p3, 1, 0 }
  0x28   : > { %s180_s26 = sshll.u32 %s173_s25, 4  ;;  %p1352_p12 = pnand %p1004_p11, %p39_p13  ;;  %s1356_s26 = int_to_ptr.vmem [resolvable:$true] %s180_s26 }
  0x29   : > { %s1358_s29 = scalar_lea.sflag [#allocation3], %s169_s11  ;;  %s1077_s30 = scalar_lea.hbm %s1350_s24, 4096 }
  0x2a   : > { %p1078_p5 = scmp.ne.s32.totalorder %s1350_s24, %s1077_s30  ;;  %p1079_p7 = pneg %p1352_p12 }
  0x2b   : > { %s1082_s12 = scalar_lea.hbm %s1731_s0, 8192  ;;  %p1083_p10 = scmp.lt.s32.totalorder %s1350_s24, %s1731_s0 }
  0x2c   : > { %p1080_p2 = pnand %p1079_p7, %p1078_p5  ;;  %p1084_p11 = scmp.lt.s32.totalorder %s1082_s12, %s1077_s30 }
  0x2e   : > { %p1081_p8 = pneg %p1080_p2  ;;  %p1085_p13 = por %p1084_p11, %p1083_p10 }
  0x30   : > { %p1086_p0 = pnand %p1085_p13, %p1081_p8 }
  0x32   : > { %1089 = shalt.err (!%p1086_p0)
}
  0x33   : > { %s1090_s11 = scalar_lea.vmem %s1356_s26, 4096  ;;  %s1230_s20 = smov [#allocation2]  }
  0x34   : > { %p1091_p1 = scmp.ne.s32.totalorder %s1356_s26, %s1090_s11  ;;  %s1095_s25 = sshll.u32 %s1230_s20, 4  ;;  %s1096_s25 = int_to_ptr.vmem [resolvable:$false] %s1095_s25 }
  0x35   : > { %s1097_s7 = scalar_lea.vmem %s1096_s25, 8192  ;;  %p1098_p2 = scmp.lt.s32.totalorder %s1356_s26, %s1096_s25 }
  0x36   : > { %p1093_p6 = pnand %p1091_p1, %p1079_p7  ;;  %p1099_p3 = scmp.lt.s32.totalorder %s1097_s7, %s1090_s11 }
  0x38   : > { %p1094_p5 = pneg %p1093_p6  ;;  %p1100_p4 = por %p1099_p3, %p1098_p2 }
  0x3a   : > { %p1101_p9 = pnand %p1100_p4, %p1094_p5 }
  0x3c   : > { %1104 = shalt.err (!%p1101_p9)
}
  0x3d   : > { %998 = dma.hbm_to_vmem [thread:$0]  (!%p1352_p12), %s1350_s24, 4096, %s1356_s26, %s1358_s29, %s1228_s5, %s1228_s5, %s1229_s6  }
  0x3e   : > { %p1747_p1 = scmp.ne.s32.totalorder %s1742_s23, 0 }
  0x3f   : > { %s1385_s30 = sand.u32 (!%p1747_p1), 1, %s1217_s16   ;;  %p1748_p4 = scmp.ne.s32.totalorder (!%p1747_p1), %s1740_s21, 0 }
  0x40   : > { %192 = sbr.rel (%p1747_p1) target bundleno = 445 (0x1bd), region = 28  ;;  %s800_s8 = sshll.u32 (!%p1747_p1), %s1385_s30, 8 }
  0x41   : > { %s195_s12 = scalar_lea.sflag (!%p1747_p1), [#allocation3], %s1385_s30  ;;  %s1391_s28 = scalar_lea.vmem (!%p1747_p1), [#allocation2], %s800_s8 }
  0x45   : > { %1196 = dma.done.wait (%p1748_p4), %s195_s12, 4096  }
  0x46   : > { %1198 = vsyncadd (%p1748_p4), %s195_s12, 4294963200  ;;  %p1749_p6 = scmp.eq.s32.totalorder %s1283_s19, 0 }
  0x48   : > { %1200 = dma.done.wait (%p1749_p6), [#allocation6], 2048   ;;  %p1750_p9 = pmov %p1749_p6 }
  0x49   : > { %v276_v0 = vld [vmem:[#allocation5 + $0x78] sm:$0xff]  ;;  %v275_v1 = vld [vmem:[#allocation5 + $0x70] sm:$0xff]  ;;  %v274_v2 = vld [vmem:[#allocation5 + $0x68] sm:$0xff]  ;;  %s1439_s21 = scalar_lea.vmem [#allocation7], %s800_s8  ;;  %p1751_p3 = scmp.ne.s32.totalorder %s1283_s19, 0 }
  0x4a   : > { %1202 = vsyncadd (%p1750_p9), [#allocation6], 4294965248  ;;  %863 = vmatprep.subr.mxu0 %v276_v0  ;;  %943 = vmatprep.subr.mxu1 %v276_v0  ;;  %v273_v3 = vld [vmem:[#allocation5 + $0x60] sm:$0xff]  ;;  %v272_v4 = vld [vmem:[#allocation5 + $0x58] sm:$0xff] }
  0x4b   : > { %864 = vmatpush3.msra.mxu0 %v276_v0  ;;  %959 = vmatpush3.msra.mxu1 %v276_v0  ;;  %v271_v5 = vld [vmem:[#allocation5 + $0x50] sm:$0xff]  ;;  %v270_v6 = vld [vmem:[#allocation5 + $0x48] sm:$0xff]  ;;  %v269_v7 = vld [vmem:[#allocation5 + $0x40] sm:$0xff] }
  0x4c   : > { %865 = vmatprep.subr.mxu0 %v275_v1  ;;  %944 = vmatprep.subr.mxu1 %v275_v1  ;;  %v268_v8 = vld [vmem:[#allocation5 + $0x38] sm:$0xff]  ;;  %v267_v9 = vld [vmem:[#allocation5 + $0x30] sm:$0xff]  ;;  %v266_v10 = vld [vmem:[#allocation5 + $0x28] sm:$0xff] }
  0x4d   : > { %866 = vmatpush3.msra.mxu0 %v275_v1  ;;  %960 = vmatpush3.msra.mxu1 %v275_v1  ;;  %v265_v11 = vld [vmem:[#allocation5 + $0x20] sm:$0xff]  ;;  %v264_v12 = vld [vmem:[#allocation5 + $0x18] sm:$0xff]  ;;  %v263_v13 = vld [vmem:[#allocation5 + $0x10] sm:$0xff] }
  0x4e   : > { %867 = vmatprep.subr.mxu0 %v274_v2  ;;  %945 = vmatprep.subr.mxu1 %v274_v2  ;;  %v262_v14 = vld [vmem:[#allocation5 + $0x8] sm:$0xff]  ;;  %v261_v15 = vld [vmem:[#allocation5] sm:$0xff]  ;;  %v231_v20 = vld [vmem:[%s1391_s28 + $0x10] sm:$0xff] }
  0x4f   : > { %868 = vmatpush3.msra.mxu0 %v274_v2  ;;  %961 = vmatpush3.msra.mxu1 %v274_v2  ;;  %v229_v16 = vld [vmem:[%s1391_s28] sm:$0xff]  ;;  %v230_v18 = vld [vmem:[%s1391_s28 + $0x8] sm:$0xff]  ;;  %v247_v21 = vld [vmem:[%s1391_s28 + $0x90] sm:$0xff] }
  0x50   : > { %869 = vmatprep.subr.mxu0 %v273_v3  ;;  %946 = vmatprep.subr.mxu1 %v273_v3  ;;  %v245_v17 = vld [vmem:[%s1391_s28 + $0x80] sm:$0xff]  ;;  %v246_v19 = vld [vmem:[%s1391_s28 + $0x88] sm:$0xff]  ;;  %v232_v22 = vld [vmem:[%s1391_s28 + $0x18] sm:$0xff] }
  0x51   : > { %870 = vmatpush3.msra.mxu0 %v273_v3  ;;  %962 = vmatpush3.msra.mxu1 %v273_v3  ;;  %v248_v23 = vld [vmem:[%s1391_s28 + $0x98] sm:$0xff]  ;;  %v233_v24 = vld [vmem:[%s1391_s28 + $0x20] sm:$0xff]  ;;  %v234_v26 = vld [vmem:[%s1391_s28 + $0x28] sm:$0xff] }
  0x52   : > { %871 = vmatprep.subr.mxu0 %v272_v4  ;;  %947 = vmatprep.subr.mxu1 %v272_v4  ;;  %v249_v25 = vld [vmem:[%s1391_s28 + $0xa0] sm:$0xff]  ;;  %v250_v27 = vld [vmem:[%s1391_s28 + $0xa8] sm:$0xff]  ;;  %v235_v28 = vld [vmem:[%s1391_s28 + $0x30] sm:$0xff] }
  0x53   : > { %872 = vmatpush3.msra.mxu0 %v272_v4  ;;  %963 = vmatpush3.msra.mxu1 %v272_v4  ;;  %v251_v29 = vld [vmem:[%s1391_s28 + $0xb0] sm:$0xff]  ;;  %v236_v30 = vld [vmem:[%s1391_s28 + $0x38] sm:$0xff]  ;;  %v237_v32 = vld [vmem:[%s1391_s28 + $0x40] sm:$0xff] }
  0x54   : > { %873 = vmatprep.subr.mxu0 %v271_v5  ;;  %948 = vmatprep.subr.mxu1 %v271_v5  ;;  %v252_v31 = vld [vmem:[%s1391_s28 + $0xb8] sm:$0xff]  ;;  %v253_v33 = vld [vmem:[%s1391_s28 + $0xc0] sm:$0xff]  ;;  %v238_v34 = vld [vmem:[%s1391_s28 + $0x48] sm:$0xff] }
  0x55   : > { %874 = vmatpush3.msra.mxu0 %v271_v5  ;;  %964 = vmatpush3.msra.mxu1 %v271_v5  ;;  %v254_v35 = vld [vmem:[%s1391_s28 + $0xc8] sm:$0xff]  ;;  %v239_v36 = vld [vmem:[%s1391_s28 + $0x50] sm:$0xff]  ;;  %v240_v38 = vld [vmem:[%s1391_s28 + $0x58] sm:$0xff] }
  0x56   : > { %875 = vmatprep.subr.mxu0 %v270_v6  ;;  %949 = vmatprep.subr.mxu1 %v270_v6  ;;  %v255_v37 = vld [vmem:[%s1391_s28 + $0xd0] sm:$0xff]  ;;  %v256_v39 = vld [vmem:[%s1391_s28 + $0xd8] sm:$0xff]  ;;  %v241_v40 = vld [vmem:[%s1391_s28 + $0x60] sm:$0xff] }
  0x57   : > { %876 = vmatpush3.msra.mxu0 %v270_v6  ;;  %965 = vmatpush3.msra.mxu1 %v270_v6  ;;  %v257_v41 = vld [vmem:[%s1391_s28 + $0xe0] sm:$0xff]  ;;  %v242_v42 = vld [vmem:[%s1391_s28 + $0x68] sm:$0xff]  ;;  %v243_v44 = vld [vmem:[%s1391_s28 + $0x70] sm:$0xff] }
  0x58   : > { %877 = vmatprep.subr.mxu0 %v269_v7  ;;  %950 = vmatprep.subr.mxu1 %v269_v7  ;;  %v258_v43 = vld [vmem:[%s1391_s28 + $0xe8] sm:$0xff]  ;;  %v259_v45 = vld [vmem:[%s1391_s28 + $0xf0] sm:$0xff]  ;;  %v244_v46 = vld [vmem:[%s1391_s28 + $0x78] sm:$0xff] }
  0x59   : > { %878 = vmatpush3.msra.mxu0 %v269_v7  ;;  %966 = vmatpush3.msra.mxu1 %v269_v7  ;;  %v260_v47 = vld [vmem:[%s1391_s28 + $0xf8] sm:$0xff] }
  0x5a   : > { %879 = vmatprep.subr.mxu0 %v268_v8  ;;  %951 = vmatprep.subr.mxu1 %v268_v8 }
  0x5b   : > { %880 = vmatpush3.msra.mxu0 %v268_v8  ;;  %967 = vmatpush3.msra.mxu1 %v268_v8 }
  0x5c   : > { %881 = vmatprep.subr.mxu0 %v267_v9  ;;  %952 = vmatprep.subr.mxu1 %v267_v9 }
  0x5d   : > { %882 = vmatpush3.msra.mxu0 %v267_v9  ;;  %968 = vmatpush3.msra.mxu1 %v267_v9 }
  0x5e   : > { %883 = vmatprep.subr.mxu0 %v266_v10  ;;  %953 = vmatprep.subr.mxu1 %v266_v10 }
  0x5f   : > { %884 = vmatpush3.msra.mxu0 %v266_v10  ;;  %969 = vmatpush3.msra.mxu1 %v266_v10 }
  0x60   : > { %885 = vmatprep.subr.mxu0 %v265_v11  ;;  %954 = vmatprep.subr.mxu1 %v265_v11 }
  0x61   : > { %886 = vmatpush3.msra.mxu0 %v265_v11  ;;  %970 = vmatpush3.msra.mxu1 %v265_v11 }
  0x62   : > { %887 = vmatprep.subr.mxu0 %v264_v12  ;;  %955 = vmatprep.subr.mxu1 %v264_v12 }
  0x63   : > { %888 = vmatpush3.msra.mxu0 %v264_v12  ;;  %971 = vmatpush3.msra.mxu1 %v264_v12 }
  0x64   : > { %889 = vmatprep.subr.mxu0 %v263_v13  ;;  %956 = vmatprep.subr.mxu1 %v263_v13 }
  0x65   : > { %890 = vmatpush3.msra.mxu0 %v263_v13  ;;  %972 = vmatpush3.msra.mxu1 %v263_v13 }
  0x66   : > { %891 = vmatprep.subr.mxu0 %v262_v14  ;;  %957 = vmatprep.subr.mxu1 %v262_v14 }
  0x67   : > { %892 = vmatpush3.msra.mxu0 %v262_v14  ;;  %973 = vmatpush3.msra.mxu1 %v262_v14 }
  0x68   : > { %893 = vmatprep.subr.mxu0 %v261_v15  ;;  %958 = vmatprep.subr.mxu1 %v261_v15 }
  0x69   : > { %894 = vmatpush3.msra.mxu0 %v261_v15  ;;  %974 = vmatpush3.msra.mxu1 %v261_v15 }
  0x6a   : > { %895 = vmatprep.mubr.f32.mxu0 %v229_v16  ;;  %919 = vmatprep.mubr.f32.mxu1 %v245_v17 }
  0x6b   : > { %896 = vmatmul.mubr.f32.vlgmr.msra.gmra.mxu0 %v230_v18  ;;  %920 = vmatmul.mubr.f32.vlgmr.msra.gmra.mxu1 %v246_v19 }
  0x6c   : > { %898 = vmatprep.mubr.f32.mxu0 %v231_v20  ;;  %922 = vmatprep.mubr.f32.mxu1 %v247_v21 }
  0x6f   : > { %899 = vmatmul.mubr.f32.gmra.mxu0 %v232_v22  ;;  %923 = vmatmul.mubr.f32.gmra.mxu1 %v248_v23 }
  0x70   : > { %901 = vmatprep.mubr.f32.mxu0 %v233_v24  ;;  %925 = vmatprep.mubr.f32.mxu1 %v249_v25 }
  0x73   : > { %902 = vmatmul.mubr.f32.gmra.mxu0 %v234_v26  ;;  %926 = vmatmul.mubr.f32.gmra.mxu1 %v250_v27 }
  0x74   : > { %904 = vmatprep.mubr.f32.mxu0 %v235_v28  ;;  %928 = vmatprep.mubr.f32.mxu1 %v251_v29 }
  0x77   : > { %905 = vmatmul.mubr.f32.gmra.mxu0 %v236_v30  ;;  %929 = vmatmul.mubr.f32.gmra.mxu1 %v252_v31 }
  0x78   : > { %907 = vmatprep.mubr.f32.mxu0 %v237_v32  ;;  %931 = vmatprep.mubr.f32.mxu1 %v253_v33 }
  0x7b   : > { %908 = vmatmul.mubr.f32.gmra.mxu0 %v238_v34  ;;  %932 = vmatmul.mubr.f32.gmra.mxu1 %v254_v35 }
  0x7c   : > { %910 = vmatprep.mubr.f32.mxu0 %v239_v36  ;;  %934 = vmatprep.mubr.f32.mxu1 %v255_v37 }
  0x7f   : > { %911 = vmatmul.mubr.f32.gmra.mxu0 %v240_v38  ;;  %935 = vmatmul.mubr.f32.gmra.mxu1 %v256_v39 }
  0x80   : > { %913 = vmatprep.mubr.f32.mxu0 %v241_v40  ;;  %937 = vmatprep.mubr.f32.mxu1 %v257_v41 }
  0x83   : > { %914 = vmatmul.mubr.f32.gmra.mxu0 %v242_v42  ;;  %938 = vmatmul.mubr.f32.gmra.mxu1 %v258_v43 }
  0x84   : > { %916 = vmatprep.mubr.f32.mxu0 %v243_v44  ;;  %940 = vmatprep.mubr.f32.mxu1 %v259_v45 }
  0x87   : > { %917 = vmatmul.mubr.f32.gmra.mxu0 %v244_v46  ;;  %941 = vmatmul.mubr.f32.gmra.mxu1 %v260_v47 }
 0x12b   : > { %v1433_v48 = vpop.f32.mrf.mxu0  ;;  %v1435_v49 = vpop.f32.mrf.mxu1 }
 0x12c   : > { %503 = vst [vmem:[%s1439_s21 + $0x8] sm:$0xff] %v1433_v48  ;;  %519 = vst [vmem:[%s1439_s21 + $0x88] sm:$0xff] %v1435_v49 }
 0x12d   : > { %v1445_v50 = vpop.f32.mrf.mxu0  ;;  %v1447_v51 = vpop.f32.mrf.mxu1 }
 0x12e   : > { %502 = vst [vmem:[%s1439_s21] sm:$0xff] %v1445_v50  ;;  %518 = vst [vmem:[%s1439_s21 + $0x80] sm:$0xff] %v1447_v51 }
 0x12f   : > { %v1453_v52 = vpop.f32.mrf.mxu0  ;;  %v1455_v53 = vpop.f32.mrf.mxu1 }
 0x130   : > { %505 = vst [vmem:[%s1439_s21 + $0x18] sm:$0xff] %v1453_v52  ;;  %521 = vst [vmem:[%s1439_s21 + $0x98] sm:$0xff] %v1455_v53 }
 0x131   : > { %v1461_v54 = vpop.f32.mrf.mxu0  ;;  %v1463_v55 = vpop.f32.mrf.mxu1 }
 0x132   : > { %504 = vst [vmem:[%s1439_s21 + $0x10] sm:$0xff] %v1461_v54  ;;  %520 = vst [vmem:[%s1439_s21 + $0x90] sm:$0xff] %v1463_v55 }
 0x133   : > { %v1469_v56 = vpop.f32.mrf.mxu0  ;;  %v1471_v57 = vpop.f32.mrf.mxu1 }
 0x134   : > { %507 = vst [vmem:[%s1439_s21 + $0x28] sm:$0xff] %v1469_v56  ;;  %523 = vst [vmem:[%s1439_s21 + $0xa8] sm:$0xff] %v1471_v57 }
 0x135   : > { %v1477_v58 = vpop.f32.mrf.mxu0  ;;  %v1479_v59 = vpop.f32.mrf.mxu1 }
 0x136   : > { %506 = vst [vmem:[%s1439_s21 + $0x20] sm:$0xff] %v1477_v58  ;;  %522 = vst [vmem:[%s1439_s21 + $0xa0] sm:$0xff] %v1479_v59 }
 0x137   : > { %v1485_v60 = vpop.f32.mrf.mxu0  ;;  %v1487_v61 = vpop.f32.mrf.mxu1 }
 0x138   : > { %509 = vst [vmem:[%s1439_s21 + $0x38] sm:$0xff] %v1485_v60  ;;  %525 = vst [vmem:[%s1439_s21 + $0xb8] sm:$0xff] %v1487_v61 }
 0x139   : > { %v1493_v62 = vpop.f32.mrf.mxu0  ;;  %v1495_v63 = vpop.f32.mrf.mxu1 }
 0x13a   : > { %508 = vst [vmem:[%s1439_s21 + $0x30] sm:$0xff] %v1493_v62  ;;  %524 = vst [vmem:[%s1439_s21 + $0xb0] sm:$0xff] %v1495_v63 }
 0x13b   : > { %v1501_v0 = vpop.f32.mrf.mxu0  ;;  %v1503_v1 = vpop.f32.mrf.mxu1 }
 0x13c   : > { %511 = vst [vmem:[%s1439_s21 + $0x48] sm:$0xff] %v1501_v0  ;;  %527 = vst [vmem:[%s1439_s21 + $0xc8] sm:$0xff] %v1503_v1 }
 0x13d   : > { %v1509_v2 = vpop.f32.mrf.mxu0  ;;  %v1511_v3 = vpop.f32.mrf.mxu1 }
 0x13e   : > { %510 = vst [vmem:[%s1439_s21 + $0x40] sm:$0xff] %v1509_v2  ;;  %526 = vst [vmem:[%s1439_s21 + $0xc0] sm:$0xff] %v1511_v3 }
 0x13f   : > { %v1517_v4 = vpop.f32.mrf.mxu0  ;;  %v1519_v5 = vpop.f32.mrf.mxu1 }
 0x140   : > { %513 = vst [vmem:[%s1439_s21 + $0x58] sm:$0xff] %v1517_v4  ;;  %529 = vst [vmem:[%s1439_s21 + $0xd8] sm:$0xff] %v1519_v5 }
 0x141   : > { %v1525_v6 = vpop.f32.mrf.mxu0  ;;  %v1527_v7 = vpop.f32.mrf.mxu1 }
 0x142   : > { %512 = vst [vmem:[%s1439_s21 + $0x50] sm:$0xff] %v1525_v6  ;;  %528 = vst [vmem:[%s1439_s21 + $0xd0] sm:$0xff] %v1527_v7 }
 0x143   : > { %v1533_v8 = vpop.f32.mrf.mxu0  ;;  %v1535_v9 = vpop.f32.mrf.mxu1 }
 0x144   : > { %515 = vst [vmem:[%s1439_s21 + $0x68] sm:$0xff] %v1533_v8  ;;  %531 = vst [vmem:[%s1439_s21 + $0xe8] sm:$0xff] %v1535_v9 }
 0x145   : > { %v1541_v10 = vpop.f32.mrf.mxu0  ;;  %v1543_v11 = vpop.f32.mrf.mxu1 }
 0x146   : > { %514 = vst [vmem:[%s1439_s21 + $0x60] sm:$0xff] %v1541_v10  ;;  %530 = vst [vmem:[%s1439_s21 + $0xe0] sm:$0xff] %v1543_v11  ;;  %537 = sbr.rel (%p1751_p3) target bundleno = 333 (0x14d), region = 40 }
 0x147   : > { %v1549_v12 = vpop.f32.mrf.mxu0  ;;  %v1551_v13 = vpop.f32.mrf.mxu1 }
 0x148   : > { %517 = vst [vmem:[%s1439_s21 + $0x78] sm:$0xff] %v1549_v12  ;;  %533 = vst [vmem:[%s1439_s21 + $0xf8] sm:$0xff] %v1551_v13 }
 0x149   : > { %v1557_v14 = vpop.f32.mrf.mxu0  ;;  %v1559_v15 = vpop.f32.mrf.mxu1 }
 0x14a   : > { %516 = vst [vmem:[%s1439_s21 + $0x70] sm:$0xff] %v1557_v14  ;;  %532 = vst [vmem:[%s1439_s21 + $0xf0] sm:$0xff] %v1559_v15 }
 0x14b   : > { %v1231_v16 = vmov 0.0  }
 0x14c   : > { %538 = vst [vmem:[#allocation8] sm:$0x1] %v1231_v16  ;;  %539 = vst [vmem:[#allocation10] sm:$0x1] %v1231_v16 }
 0x14d PF: > { %v541_v17 = vadd.f32 %v1433_v48, %v1445_v50  ;;  %s814_s23 = sshll.u32 %s1283_s19, 12  ;;  %s666_s26 = sshll.u32 %s1439_s21, 4  ;;  %v581_v20 = vmul.f32 %v1445_v50, %v1445_v50  ;;  %v582_v21 = vmul.f32 %v1433_v48, %v1433_v48  ;;  %s1578_s26 = int_to_ptr.vmem [resolvable:$true] %s666_s26 }
 0x14e   : > { %s1574_s24 = scalar_lea.hbm %s1733_s2, %s814_s23  ;;  %s653_s29 = scalar_lea.sflag [#allocation4], %s1385_s30 }
 0x14f   : > { %v542_v18 = vadd.f32 %v541_v17, %v1461_v54  ;;  %s1105_s13 = scalar_lea.vmem %s1578_s26, 4096  ;;  %p1752_p7 = scmp.ne.s32.totalorder %s1745_s10, 0 }
 0x150   : > { %p1106_p12 = scmp.ne.s32.totalorder %s1578_s26, %s1105_s13  ;;  %s1232_s14 = smov [#allocation7]  }
 0x151   : > { %v543_v19 = vadd.f32 %v1453_v52, %v542_v18  ;;  %s1109_s11 = sshll.u32 %s1232_s14, 4  ;;  %s1110_s11 = int_to_ptr.vmem [resolvable:$false] %s1109_s11 }
 0x152   : > { %p1107_p8 = pnand %p1106_p12, %p1752_p7  ;;  %s1111_s20 = scalar_lea.vmem %s1110_s11, 8192 }
 0x153   : > { %v544_v22 = vadd.f32 %v543_v19, %v1477_v58  ;;  %p1112_p11 = scmp.lt.s32.totalorder %s1578_s26, %s1110_s11  ;;  %p1113_p13 = scmp.lt.s32.totalorder %s1111_s20, %s1105_s13 }
 0x154   : > { %p1108_p10 = pneg %p1107_p8 }
 0x155   : > { %p1114_p0 = por %p1113_p13, %p1112_p11 }
 0x157   : > { %p1115_p5 = pnand %p1114_p0, %p1108_p10 }
 0x159   : > { %1118 = shalt.err (!%p1115_p5)
}
 0x15a   : > { %s1119_s25 = scalar_lea.hbm %s1574_s24, 4096  ;;  %s1123_s12 = scalar_lea.hbm %s1733_s2, 8192 }
 0x15b   : > { %p1120_p2 = scmp.ne.s32.totalorder %s1574_s24, %s1119_s25  ;;  %p1124_p6 = scmp.lt.s32.totalorder %s1574_s24, %s1733_s2 }
 0x15c   : > { %p1125_p9 = scmp.lt.s32.totalorder %s1123_s12, %s1119_s25 }
 0x15d   : > { %p1121_p1 = pnand %p1120_p2, %p1752_p7 }
 0x15e   : > { %p1126_p3 = por %p1125_p9, %p1124_p6 }
 0x15f   : > { %p1122_p4 = pneg %p1121_p1 }
 0x161   : > { %p1127_p12 = pnand %p1126_p3, %p1122_p4 }
 0x163   : > { %1130 = shalt.err (!%p1127_p12)
}
 0x164   : > { %s1233_s23 = smov 128   ;;  %s1234_s5 = smov 8   ;;  %v583_v23 = vmul.f32 %v1461_v54, %v1461_v54  ;;  %v545_v24 = vadd.f32 %v1469_v56, %v544_v22  ;;  %v584_v25 = vmul.f32 %v1453_v52, %v1453_v52  ;;  %v613_v26 = vadd.f32 %v582_v21, %v581_v20 }
 0x165   : > { %981 = dma.vmem_to_hbm [thread:$0]  (%p1752_p7), %s1578_s26, 4096, %s1574_s24, %s653_s29, %s1233_s23, %s1233_s23, %s1234_s5   ;;  %v585_v28 = vmul.f32 %v1477_v58, %v1477_v58  ;;  %v586_v31 = vmul.f32 %v1469_v56, %v1469_v56  ;;  %v587_v34 = vmul.f32 %v1493_v62, %v1493_v62  ;;  %v588_v37 = vmul.f32 %v1485_v60, %v1485_v60 }
 0x166   : > { %v546_v27 = vadd.f32 %v545_v24, %v1493_v62  ;;  %v614_v29 = vadd.f32 %v613_v26, %v583_v23  ;;  %v589_v40 = vmul.f32 %v1509_v2, %v1509_v2  ;;  %v590_v43 = vmul.f32 %v1501_v0, %v1501_v0  ;;  %s1235_s10 = smov [#allocation8]   ;;  %p1753_p8 = scmp.eq.s32.totalorder %s1283_s19, 1 }
 0x167   : > { %v591_v46 = vmul.f32 %v1525_v6, %v1525_v6  ;;  %v592_v50 = vmul.f32 %v1517_v4, %v1517_v4  ;;  %v593_v56 = vmul.f32 %v1541_v10, %v1541_v10  ;;  %v594_v62 = vmul.f32 %v1533_v8, %v1533_v8  ;;  %s680_s30 = sshll.u32 %s1235_s10, 4  ;;  %s681_s30 = int_to_ptr.vmem [resolvable:$true] %s680_s30 }
 0x168   : > { %v547_v30 = vadd.f32 %v1485_v60, %v546_v27  ;;  %v615_v32 = vadd.f32 %v614_v29, %v584_v25  ;;  %v596_v17 = vmul.f32 %v1549_v12, %v1549_v12  ;;  %v597_v19 = vmul.f32 %v1447_v51, %v1447_v51  ;;  %s1131_s6 = scalar_lea.vmem %s681_s30, 16  ;;  %s1137_s24 = scalar_lea.vmem %s681_s30, 32 }
 0x169   : > { %v598_v21 = vmul.f32 %v1435_v49, %v1435_v49  ;;  %v599_v23 = vmul.f32 %v1463_v55, %v1463_v55  ;;  %v600_v25 = vmul.f32 %v1455_v53, %v1455_v53  ;;  %v601_v27 = vmul.f32 %v1479_v59, %v1479_v59  ;;  %p1132_p7 = scmp.ne.s32.totalorder %s681_s30, %s1131_s6  ;;  %p1138_p13 = scmp.lt.s32.totalorder %s681_s30, %s681_s30 }
 0x16a   : > { %v548_v33 = vadd.f32 %v547_v30, %v1509_v2  ;;  %v616_v35 = vadd.f32 %v615_v32, %v585_v28  ;;  %v602_v29 = vmul.f32 %v1471_v57, %v1471_v57  ;;  %p1139_p0 = scmp.lt.s32.totalorder %s1137_s24, %s1131_s6 }
 0x16b   : > { %p1133_p10 = pnand %p1132_p7, %p1753_p8 }
 0x16c   : > { %v549_v36 = vadd.f32 %v1501_v0, %v548_v33  ;;  %v617_v38 = vadd.f32 %v616_v35, %v586_v31  ;;  %v603_v31 = vmul.f32 %v1495_v63, %v1495_v63  ;;  %v604_v33 = vmul.f32 %v1487_v61, %v1487_v61  ;;  %p1140_p5 = por %p1139_p0, %p1138_p13 }
 0x16d   : > { %v605_v35 = vmul.f32 %v1511_v3, %v1511_v3  ;;  %p1134_p11 = pneg %p1133_p10 }
 0x16e   : > { %v550_v39 = vadd.f32 %v549_v36, %v1525_v6  ;;  %v618_v41 = vadd.f32 %v617_v38, %v587_v34  ;;  %v595_v6 = vmul.f32 %v1557_v14, %v1557_v14 }
 0x16f   : > { %p1141_p2 = pnand %p1140_p5, %p1134_p11 }
 0x170   : > { %v551_v42 = vadd.f32 %v1517_v4, %v550_v39  ;;  %v619_v44 = vadd.f32 %v618_v41, %v588_v37  ;;  %v606_v37 = vmul.f32 %v1503_v1, %v1503_v1  ;;  %v607_v39 = vmul.f32 %v1527_v7, %v1527_v7 }
 0x171   : > { %v608_v41 = vmul.f32 %v1519_v5, %v1519_v5 }
 0x172   : > { %v552_v45 = vadd.f32 %v551_v42, %v1541_v10  ;;  %v620_v47 = vadd.f32 %v619_v44, %v589_v40 }
 0x174   : > { %v553_v48 = vadd.f32 %v1533_v8, %v552_v45  ;;  %v621_v52 = vadd.f32 %v620_v47, %v590_v43  ;;  %v609_v43 = vmul.f32 %v1543_v11, %v1543_v11  ;;  %v610_v45 = vmul.f32 %v1535_v9, %v1535_v9 }
 0x175   : > { %v611_v47 = vmul.f32 %v1559_v15, %v1559_v15 }
 0x176   : > { %v554_v54 = vadd.f32 %v553_v48, %v1557_v14  ;;  %v622_v58 = vadd.f32 %v621_v52, %v591_v46 }
 0x178   : > { %v555_v60 = vadd.f32 %v1549_v12, %v554_v54  ;;  %v623_v0 = vadd.f32 %v622_v58, %v592_v50 }
 0x17a   : > { %v556_v2 = vadd.f32 %v555_v60, %v1447_v51  ;;  %v624_v16 = vadd.f32 %v623_v0, %v593_v56 }
 0x17c   : > { %v557_v4 = vadd.f32 %v1435_v49, %v556_v2  ;;  %v625_v18 = vadd.f32 %v624_v16, %v594_v62  ;;  %v540_v62 = vld [vmem:[#allocation8] sm:$0x1] }
 0x17e   : > { %v558_v10 = vadd.f32 %v557_v4, %v1463_v55  ;;  %v626_v20 = vadd.f32 %v625_v18, %v595_v6 }
 0x180   : > { %v559_v8 = vadd.f32 %v1455_v53, %v558_v10  ;;  %v627_v22 = vadd.f32 %v626_v20, %v596_v17 }
 0x182   : > { %v560_v14 = vadd.f32 %v559_v8, %v1479_v59  ;;  %v628_v24 = vadd.f32 %v627_v22, %v597_v19 }
 0x184   : > { %v561_v12 = vadd.f32 %v1471_v57, %v560_v14  ;;  %v629_v26 = vadd.f32 %v628_v24, %v598_v21 }
 0x186   : > { %v562_v51 = vadd.f32 %v561_v12, %v1495_v63  ;;  %v630_v28 = vadd.f32 %v629_v26, %v599_v23 }
 0x188   : > { %v563_v49 = vadd.f32 %v1487_v61, %v562_v51  ;;  %v631_v30 = vadd.f32 %v630_v28, %v600_v25 }
 0x18a   : > { %v564_v55 = vadd.f32 %v563_v49, %v1511_v3  ;;  %v632_v32 = vadd.f32 %v631_v30, %v601_v27 }
 0x18c   : > { %v565_v53 = vadd.f32 %v1503_v1, %v564_v55  ;;  %v633_v34 = vadd.f32 %v632_v32, %v602_v29 }
 0x18e   : > { %v566_v59 = vadd.f32 %v565_v53, %v1527_v7  ;;  %v634_v36 = vadd.f32 %v633_v34, %v603_v31 }
 0x190   : > { %v567_v57 = vadd.f32 %v1519_v5, %v566_v59  ;;  %v635_v38 = vadd.f32 %v634_v36, %v604_v33  ;;  %v612_v5 = vmul.f32 %v1551_v13, %v1551_v13 }
 0x192   : > { %v568_v63 = vadd.f32 %v567_v57, %v1543_v11  ;;  %v636_v40 = vadd.f32 %v635_v38, %v605_v35 }
 0x194   : > { %v569_v61 = vadd.f32 %v1535_v9, %v568_v63  ;;  %v637_v42 = vadd.f32 %v636_v40, %v606_v37 }
 0x196   : > { %v570_v3 = vadd.f32 %v569_v61, %v1559_v15  ;;  %v638_v44 = vadd.f32 %v637_v42, %v607_v39 }
 0x198   : > { %v571_v1 = vadd.f32 %v1551_v13, %v570_v3  ;;  %v639_v46 = vadd.f32 %v638_v44, %v608_v41 }
 0x19a   : > { %v572_v7 = vrot.slane %v571_v1, 4  ;;  %v640_v48 = vadd.f32 %v639_v46, %v609_v43 }
 0x19c   : > { %v573_v50 = vadd.f32 %v572_v7, %v571_v1  ;;  %v641_v52 = vadd.f32 %v640_v48, %v610_v45 }
 0x19e   : > { %v574_v54 = vrot.slane %v573_v50, 2  ;;  %v642_v56 = vadd.f32 %v641_v52, %v611_v47 }
 0x1a0   : > { %v575_v11 = vadd.f32 %v574_v54, %v573_v50  ;;  %v643_v58 = vadd.f32 %v642_v56, %v612_v5 }
 0x1a2   : > { %v576_v60 = vrot.slane %v575_v11, 1  ;;  %v644_v0 = vrot.slane %v643_v58, 4 }
 0x1a4   : > { %v577_v9 = vadd.f32 %v576_v60, %v575_v11  ;;  %v645_v2 = vadd.f32 %v644_v0, %v643_v58 }
 0x1a6   : > { %v578_v6 = vadd.f32 %v577_v9, %v540_v62  ;;  %v646_v15 = vrot.slane %v645_v2, 2 }
 0x1a8   : > { %579 = vst [vmem:[#allocation8] sm:$0x1] %v578_v6  ;;  %v647_v16 = vadd.f32 %v646_v15, %v645_v2 }
 0x1a9   : > { %1144 = shalt.err (!%p1141_p2)
}
 0x1aa   : > { %p1754_p1 = pmov %p1753_p8  ;;  %v648_v13 = vrot.slane %v647_v16, 1  ;;  %v580_v4 = vld [vmem:[#allocation10] sm:$0x1]  ;;  %s1236_s13 = smov [#allocation10]  }
 0x1ab   : > { %s691_s14 = sshll.u32 %s1236_s13, 4  ;;  %s692_s14 = int_to_ptr.vmem [resolvable:$true] %s691_s14 }
 0x1ac   : > { %983 = dma.vmem_to_hbm [thread:$0]  (%p1754_p1), %s681_s30, 16, %s1734_s3, [#allocation9]   ;;  %v649_v17 = vadd.f32 %v648_v13, %v647_v16 }
 0x1ad   : > { %s1155_s11 = scalar_lea.vmem %s692_s14, 16  ;;  %p1755_p6 = pmov %p1754_p1 }
 0x1ae   : > { %v650_v18 = vadd.f32 %v649_v17, %v580_v4  ;;  %p1156_p4 = scmp.ne.s32.totalorder %s692_s14, %s1155_s11  ;;  %s1161_s20 = scalar_lea.vmem %s692_s14, 32 }
 0x1af   : > { %p1162_p12 = scmp.lt.s32.totalorder %s692_s14, %s692_s14  ;;  %p1163_p7 = scmp.lt.s32.totalorder %s1161_s20, %s1155_s11 }
 0x1b0   : > { %651 = vst [vmem:[#allocation10] sm:$0x1] %v650_v18  ;;  %p1157_p9 = pnand %p1156_p4, %p1755_p6 }
 0x1b1   : > { %p1164_p8 = por %p1163_p7, %p1162_p12 }
 0x1b2   : > { %p1158_p3 = pneg %p1157_p9 }
 0x1b4   : > { %p1165_p10 = pnand %p1164_p8, %p1158_p3 }
 0x1b6   : > { %1168 = shalt.err (!%p1165_p10)
}
 0x1b7   : > { %p1756_p11 = pmov %p1754_p1  ;;  %p1757_p13 = pmov %p1754_p1 }
 0x1b9   : > { %985 = dma.vmem_to_hbm [thread:$0]  (%p1756_p11), %s692_s14, 16, %s1735_s4, [#allocation9]  }
 0x1ba   : > { %1204 = dma.done.wait (%p1757_p13), [#allocation9], 32   ;;  %p1758_p0 = pmov %p1754_p1 }
 0x1bc   : > { %1206 = vsyncadd (%p1758_p0), [#allocation9], 4294967264 }
 0x1bd PF: > { %s711_s8 = sand.u32 1, %s1213_s15   ;;  %p1759_p5 = scmp.ne.s32.totalorder %s1741_s22, 0 }
 0x1be   : > { %p1760_p2 = scmp.ge.s32.totalorder %s1225_s18, 2  ;;  %s712_s12 = scalar_lea.sflag [#allocation4], %s711_s8 }
 0x1c0   : > { %p1000_p1 = pnand %p1760_p2, %p1759_p5 }
 0x1c2   : > { %p1001_p4 = pneg %p1000_p1 }
 0x1c4   : > { %1208 = dma.done.wait (%p1001_p4), %s712_s12, 4096  }
 0x1c5   : > { %1210 = vsyncadd (%p1001_p4), %s712_s12, 4294963200  ;;  %p20_p6 = scmp.ge.s32.totalorder %s1317_s27, 4   ;;  %s1761_s15 = smov %s1217_s16 }
 0x1c6   : > { %s1762_s16 = smov %s1221_s17  ;;  %s1763_s17 = smov %s1337_s9 }
 0x1c7   : > { %s1764_s18 = smov %s1317_s27  ;;  %22 = sbr.rel (!%p20_p6) target bundleno = 7 (0x7), region = 97 }
 0x1cc   :  { %717 = vsyncpa [#allocation3], 1 }
 0x1cd   :  { %719 = vsyncpa [#allocation3 + $0x1], 1 }
 0x1ce   :  { %720 = vsyncpa [#allocation6], 1 }
 0x1cf   :  { %721 = vsyncpa [#allocation4], 1 }
 0x1d0   :  { %723 = vsyncpa [#allocation4 + $0x1], 1 }
 0x1d1   :  { %724 = vsyncpa [#allocation9], 1 }

</bundles_post_ra>
